<compile_context>
chip_gen: v7x
topology: tpu7x:2x2x1
jax: 0.10.0
libtpu: 0.0.40
codegen_flags: <defaults>
</compile_context>

<pallas_src>
import functools
import math

import jax
import jax.numpy as jnp
from jax.experimental import pallas as pl
from jax.experimental.pallas import tpu as pltpu

_LANES = 128
_SUBLANES = 8
_NCORES = 2                           # leading "parallel" grid axis (v7x megacore)
_TARGET_BLOCK_BYTES = 2 * 1024 * 1024  # ~2 MiB per input block per grid step
_VMEM_LIMIT_BYTES = 32 * 1024 * 1024   # 3 inputs x 2 buffers x ~2 MiB << 32 MiB


def _cdiv(a, b):
    return -(-a // b)


def _round_up(x, m):
    return _cdiv(x, m) * m


def _choose_tiling(batch, d):
    """Pick (tile_rows, grid_r, rows_total) for the (B, rows, 128) view.

    Blocks are (batch, tile_rows, 128); tile_rows is a multiple of 8 sized so
    each input block is ~_TARGET_BLOCK_BYTES (conservatively assuming f32),
    keeping 3 inputs x 2 buffers well under the v7x scoped-VMEM budget.
    """
    rows_min = _cdiv(d, _LANES)
    rows_per_core = _cdiv(rows_min, _NCORES)
    desired = max(
        _SUBLANES,
        (_TARGET_BLOCK_BYTES // (batch * _LANES * 4)) // _SUBLANES * _SUBLANES,
    )
    tile_rows = min(desired, _round_up(rows_per_core, _SUBLANES))
    grid_r = _cdiv(rows_per_core, tile_rows)
    # Re-balance tile_rows down for this grid_r to minimize padding.
    tile_rows = _round_up(_cdiv(rows_per_core, grid_r), _SUBLANES)
    rows_total = _NCORES * grid_r * tile_rows
    return tile_rows, grid_r, rows_total


def _gaussian_nll_kernel(mu_ref, ls_ref, tgt_ref, out_ref, *, eps):
    # mu_ref / ls_ref / tgt_ref : (B, tile_rows, 128) blocks (native dtype)
    # out_ref                   : (2, 8, 128) f32 resident accumulator block
    #                             (one per core; revisited across axis 1)
    r = pl.program_id(1)

    @pl.when(r == 0)
    def _init():
        out_ref[...] = jnp.zeros_like(out_ref)

    mu = mu_ref[...].astype(jnp.float32)
    ls = ls_ref[...].astype(jnp.float32)
    tgt = tgt_ref[...].astype(jnp.float32)

    mask = jnp.logical_not(jnp.isnan(tgt))

    # log(clamp(exp(ls), min=eps)) == max(ls, log(eps)) and
    # 1/sigma^2 == exp(-2*max(ls, log(eps)))  -> one EUP exp per element,
    # no log, no divide.
    # NOTE: for ls large enough that exp(ls) overflows to +inf the reference
    # yields an inf loss; this log-space form stays finite (degenerate input).
    ls_c = jnp.maximum(ls, jnp.float32(math.log(eps)))
    d = tgt - mu
    nll = ls_c + (0.5 * d * d) * jnp.exp(-2.0 * ls_c)
    # select discards the NaN branch -> masked-out NaNs never pollute the sum
    nll = jnp.where(mask, nll, jnp.float32(0.0))

    # Fold the (B*tile_rows, 128) tile into one vreg-shaped partial by summing
    # groups of 8 sublane rows: pure VPU vreg adds, no cross-lane XLU reduce.
    out_ref[0] += jnp.sum(nll.reshape(-1, _SUBLANES, _LANES), axis=0)
    out_ref[1] += jnp.sum(
        mask.astype(jnp.float32).reshape(-1, _SUBLANES, _LANES), axis=0)


def gaussian_loss(outputs, target, eps=1e-6):
    """Pallas implementation of GaussianLoss.forward.

    outputs: (B, 2, H, W)  -- channel 0 = mu, channel 1 = log_sigma
    target:  (B, 1, H, W)  -- may contain NaN
    Returns a scalar float32 loss (0.0 if the loss would be NaN).
    """
    B = outputs.shape[0]
    D = math.prod(outputs.shape[2:])

    tile_rows, grid_r, rows_total = _choose_tiling(B, D)
    D_pad = rows_total * _LANES

    # Free (contiguous) reshapes; no channel slices are materialized.
    out3 = outputs.reshape(B, 2, D)
    tgt2 = target.reshape(B, D)                      # squeeze(1) + flatten HW
    if D_pad != D:
        pad = D_pad - D
        out3 = jnp.pad(out3, ((0, 0), (0, 0), (0, pad)))                    # zeros
        tgt2 = jnp.pad(tgt2, ((0, 0), (0, pad)), constant_values=jnp.nan)   # masked
    out4 = out3.reshape(B, 2, rows_total, _LANES)
    tgt3 = tgt2.reshape(B, rows_total, _LANES)

    # Channel axis pinned (and squeezed) inside the index_maps -> no copies.
    mu_spec = pl.BlockSpec((B, pl.Squeezed(), tile_rows, _LANES),
                           lambda c, r: (0, 0, c * grid_r + r, 0))
    ls_spec = pl.BlockSpec((B, pl.Squeezed(), tile_rows, _LANES),
                           lambda c, r: (0, 1, c * grid_r + r, 0))
    tg_spec = pl.BlockSpec((B, tile_rows, _LANES),
                           lambda c, r: (0, c * grid_r + r, 0))
    out_spec = pl.BlockSpec((pl.Squeezed(), 2, _SUBLANES, _LANES),
                            lambda c, r: (c, 0, 0, 0))

    out_isz = jnp.dtype(outputs.dtype).itemsize
    tgt_isz = jnp.dtype(target.dtype).itemsize
    cost = pl.CostEstimate(
        flops=12 * B * D_pad,
        transcendentals=B * D_pad,
        bytes_accessed=(2 * B * D_pad * out_isz + B * D_pad * tgt_isz
                        + _NCORES * 2 * _SUBLANES * _LANES * 4),
    )

    partials = pl.pallas_call(
        functools.partial(_gaussian_nll_kernel, eps=float(eps)),
        out_shape=jax.ShapeDtypeStruct((_NCORES, 2, _SUBLANES, _LANES),
                                       jnp.float32),
        grid_spec=pltpu.PrefetchScalarGridSpec(
            num_scalar_prefetch=0,
            grid=(_NCORES, grid_r),
            in_specs=[mu_spec, ls_spec, tg_spec],
            out_specs=out_spec,
        ),
        compiler_params=pltpu.CompilerParams(
            dimension_semantics=("parallel", "arbitrary"),
            vmem_limit_bytes=_VMEM_LIMIT_BYTES,
        ),
        cost_estimate=cost,
    )(out4, out4, tgt3)   # same array twice: mu view + log_sigma view

    nll_sum = jnp.sum(partials[:, 0], dtype=jnp.float32)
    count = jnp.sum(partials[:, 1], dtype=jnp.float32)
    loss = nll_sum / count                 # 0/0 -> NaN when no valid pixels
    # GaussianLoss.forward: NaN loss -> 0.0
    return jnp.where(jnp.isnan(loss), jnp.float32(0.0), loss)


def _reference(outputs, target, eps=1e-6):
    mu = outputs[:, 0, ...].astype(jnp.float32)
    log_sigma = outputs[:, 1, ...].astype(jnp.float32)
    tgt = target[:, 0, ...].astype(jnp.float32)
    mask = jnp.logical_not(jnp.isnan(tgt))
    sigma = jnp.maximum(jnp.exp(log_sigma), eps)
    nll = jnp.log(sigma) + 0.5 * (tgt - mu) ** 2 / (sigma ** 2)
    nll = jnp.where(mask, nll, 0.0)
    loss = jnp.sum(nll) / jnp.sum(mask.astype(jnp.float32))
    return jnp.where(jnp.isnan(loss), jnp.float32(0.0), loss)


if __name__ == "__main__":
    B, H, W = 2, 16, 16

    key = jax.random.PRNGKey(0)
    k1, k2, k3 = jax.random.split(key, 3)

    outputs = jax.random.normal(k1, (B, 2, H, W), dtype=jnp.float32)
    target = jax.random.normal(k2, (B, 1, H, W), dtype=jnp.float32)

    # Inject some NaNs into the target to exercise the masking path.
    nan_mask = jax.random.bernoulli(k3, p=0.1, shape=(B, 1, H, W))
    target = jnp.where(nan_mask, jnp.nan, target)

    loss = jax.block_until_ready(gaussian_loss(outputs, target))
    ref = jax.block_until_ready(_reference(outputs, target))

    assert jnp.isfinite(loss), f"loss is not finite: {loss}"
    assert jnp.allclose(loss, ref, rtol=1e-3, atol=1e-3), f"{loss} vs {ref}"

    # All-NaN target must give 0.0 (the torch early-return path).
    all_nan = jnp.full((B, 1, H, W), jnp.nan, dtype=jnp.float32)
    loss0 = jax.block_until_ready(gaussian_loss(outputs, all_nan))
    assert loss0 == 0.0, f"expected 0.0 for all-NaN target, got {loss0}"

    print("KERNEL_OK")
</pallas_src>

<mosaic_0001>
module attributes {stable_mosaic.version = 11 : i64} {
  func.func @_gaussian_nll_kernel(%arg0: i32, %arg1: i32, %arg2: memref<2x1x8x128xf32, #tpu.memory_space<vmem>>, %arg3: memref<2x1x8x128xf32, #tpu.memory_space<vmem>>, %arg4: memref<2x8x128xf32, #tpu.memory_space<vmem>>, %arg5: memref<1x2x8x128xf32, #tpu.memory_space<vmem>>) attributes {dimension_semantics = [#tpu.dimension_semantics<parallel>, #tpu.dimension_semantics<arbitrary>], iteration_bounds = array<i64: 2, 1>, scalar_prefetch = 0 : i64, scratch_operands = 0 : i64, tpu.core_type = #tpu.core_type<tc>, window_params = [{transform_indices = @transform_0, window_bounds = array<i64: 2, 1, 8, 128>}, {transform_indices = @transform_1, window_bounds = array<i64: 2, 1, 8, 128>}, {transform_indices = @transform_2, window_bounds = array<i64: 2, 8, 128>}, {transform_indices = @transform_3, window_bounds = array<i64: 1, 2, 8, 128>}]} {
    %c0_i32 = arith.constant 0 : i32
    %0 = arith.cmpi eq, %arg1, %c0_i32 : i32
    %1 = arith.extui %0 : i1 to i32
    %c0_i32_0 = arith.constant 0 : i32
    %2 = arith.cmpi ne, %1, %c0_i32_0 : i32
    scf.if %2 {
      %cst_32 = arith.constant 0.000000e+00 : f32
      %39 = vector.broadcast %cst_32 : f32 to vector<2x8x128xf32>
      %c0_33 = arith.constant 0 : index
      %c0_34 = arith.constant 0 : index
      %c0_35 = arith.constant 0 : index
      %c0_36 = arith.constant 0 : index
      %40 = vector.load %arg5[%c0_33, %c0_34, %c0_35, %c0_36] : memref<1x2x8x128xf32, #tpu.memory_space<vmem>>, vector<1x2x8x128xf32>
      %41 = vector.shape_cast %40 : vector<1x2x8x128xf32> to vector<2x8x128xf32>
      %42 = vector.shape_cast %39 : vector<2x8x128xf32> to vector<1x2x8x128xf32>
      tpu.vector_store %arg5[%c0_33, %c0_34, %c0_35, %c0_36], %42 {strides = array<i32>} : memref<1x2x8x128xf32, #tpu.memory_space<vmem>>, vector<1x2x8x128xf32>,
    } else {
    }
    %c0 = arith.constant 0 : index
    %c0_1 = arith.constant 0 : index
    %c0_2 = arith.constant 0 : index
    %c0_3 = arith.constant 0 : index
    %3 = vector.load %arg2[%c0, %c0_1, %c0_2, %c0_3] : memref<2x1x8x128xf32, #tpu.memory_space<vmem>>, vector<2x1x8x128xf32>
    %4 = vector.shape_cast %3 : vector<2x1x8x128xf32> to vector<2x8x128xf32>
    %c0_4 = arith.constant 0 : index
    %c0_5 = arith.constant 0 : index
    %c0_6 = arith.constant 0 : index
    %c0_7 = arith.constant 0 : index
    %5 = vector.load %arg3[%c0_4, %c0_5, %c0_6, %c0_7] : memref<2x1x8x128xf32, #tpu.memory_space<vmem>>, vector<2x1x8x128xf32>
    %6 = vector.shape_cast %5 : vector<2x1x8x128xf32> to vector<2x8x128xf32>
    %c0_8 = arith.constant 0 : index
    %c0_9 = arith.constant 0 : index
    %c0_10 = arith.constant 0 : index
    %7 = vector.load %arg4[%c0_8, %c0_9, %c0_10] : memref<2x8x128xf32, #tpu.memory_space<vmem>>, vector<2x8x128xf32>
    %8 = arith.cmpf one, %7, %7 : vector<2x8x128xf32>
    %cst = arith.constant dense<true> : vector<2x8x128xi1>
    %9 = arith.xori %8, %cst : vector<2x8x128xi1>
    %cst_11 = arith.constant -13.8155107 : f32
    %10 = vector.broadcast %cst_11 : f32 to vector<2x8x128xf32>
    %11 = arith.maximumf %6, %10 : vector<2x8x128xf32>
    %12 = arith.subf %7, %4 : vector<2x8x128xf32>
    %cst_12 = arith.constant 5.000000e-01 : f32
    %13 = vector.broadcast %cst_12 : f32 to vector<2x8x128xf32>
    %14 = arith.mulf %13, %12 : vector<2x8x128xf32>
    %15 = arith.mulf %14, %12 : vector<2x8x128xf32>
    %cst_13 = arith.constant -2.000000e+00 : f32
    %16 = vector.broadcast %cst_13 : f32 to vector<2x8x128xf32>
    %17 = arith.mulf %16, %11 : vector<2x8x128xf32>
    %18 = math.exp %17 : vector<2x8x128xf32>
    %19 = arith.mulf %15, %18 : vector<2x8x128xf32>
    %20 = arith.addf %11, %19 : vector<2x8x128xf32>
    %cst_14 = arith.constant 0.000000e+00 : f32
    %21 = vector.broadcast %cst_14 : f32 to vector<2x8x128xf32>
    %22 = arith.select %9, %20, %21 : vector<2x8x128xi1>, vector<2x8x128xf32>
    %c0_15 = arith.constant 0 : index
    %c0_16 = arith.constant 0 : index
    %c0_17 = arith.constant 0 : index
    %c0_18 = arith.constant 0 : index
    %23 = vector.load %arg5[%c0_15, %c0_16, %c0_17, %c0_18] : memref<1x2x8x128xf32, #tpu.memory_space<vmem>>, vector<1x1x8x128xf32>
    %24 = vector.shape_cast %23 : vector<1x1x8x128xf32> to vector<8x128xf32>
    %cst_19 = arith.constant dense<0.000000e+00> : vector<8x128xf32>
    %25 = vector.multi_reduction <add>, %22, %cst_19 [0] : vector<2x8x128xf32> to vector<8x128xf32>
    %26 = arith.addf %24, %25 : vector<8x128xf32>
    %c0_20 = arith.constant 0 : index
    %c0_21 = arith.constant 0 : index
    %c0_22 = arith.constant 0 : index
    %c0_23 = arith.constant 0 : index
    %27 = vector.load %arg5[%c0_20, %c0_21, %c0_22, %c0_23] : memref<1x2x8x128xf32, #tpu.memory_space<vmem>>, vector<1x1x8x128xf32>
    %28 = vector.shape_cast %27 : vector<1x1x8x128xf32> to vector<8x128xf32>
    %29 = vector.shape_cast %26 : vector<8x128xf32> to vector<1x1x8x128xf32>
    tpu.vector_store %arg5[%c0_20, %c0_21, %c0_22, %c0_23], %29 {strides = array<i32>} : memref<1x2x8x128xf32, #tpu.memory_space<vmem>>, vector<1x1x8x128xf32>,
    %c0_24 = arith.constant 0 : index
    %c1 = arith.constant 1 : index
    %c0_25 = arith.constant 0 : index
    %c0_26 = arith.constant 0 : index
    %30 = vector.load %arg5[%c0_24, %c1, %c0_25, %c0_26] : memref<1x2x8x128xf32, #tpu.memory_space<vmem>>, vector<1x1x8x128xf32>
    %31 = vector.shape_cast %30 : vector<1x1x8x128xf32> to vector<8x128xf32>
    %32 = arith.extui %9 : vector<2x8x128xi1> to vector<2x8x128xi32>
    %33 = arith.sitofp %32 : vector<2x8x128xi32> to vector<2x8x128xf32>
    %cst_27 = arith.constant dense<0.000000e+00> : vector<8x128xf32>
    %34 = vector.multi_reduction <add>, %33, %cst_27 [0] : vector<2x8x128xf32> to vector<8x128xf32>
    %35 = arith.addf %31, %34 : vector<8x128xf32>
    %c0_28 = arith.constant 0 : index
    %c1_29 = arith.constant 1 : index
    %c0_30 = arith.constant 0 : index
    %c0_31 = arith.constant 0 : index
    %36 = vector.load %arg5[%c0_28, %c1_29, %c0_30, %c0_31] : memref<1x2x8x128xf32, #tpu.memory_space<vmem>>, vector<1x1x8x128xf32>
    %37 = vector.shape_cast %36 : vector<1x1x8x128xf32> to vector<8x128xf32>
    %38 = vector.shape_cast %35 : vector<8x128xf32> to vector<1x1x8x128xf32>
    tpu.vector_store %arg5[%c0_28, %c1_29, %c0_30, %c0_31], %38 {strides = array<i32>} : memref<1x2x8x128xf32, #tpu.memory_space<vmem>>, vector<1x1x8x128xf32>,
    return
  }
  func.func @transform_0(%arg0: i32, %arg1: i32) -> (i32, i32, i32, i32) {
    %c1_i32 = arith.constant 1 : i32
    %0 = arith.muli %arg0, %c1_i32 : i32
    %1 = arith.addi %0, %arg1 : i32
    %c0_i32 = arith.constant 0 : i32
    %c0_i32_0 = arith.constant 0 : i32
    %c0_i32_1 = arith.constant 0 : i32
    %c0_i32_2 = arith.constant 0 : i32
    return %c0_i32, %c0_i32_0, %1, %c0_i32_1 : i32, i32, i32, i32
  }
  func.func @transform_1(%arg0: i32, %arg1: i32) -> (i32, i32, i32, i32) {
    %c1_i32 = arith.constant 1 : i32
    %0 = arith.muli %arg0, %c1_i32 : i32
    %1 = arith.addi %0, %arg1 : i32
    %c0_i32 = arith.constant 0 : i32
    %c1_i32_0 = arith.constant 1 : i32
    %c0_i32_1 = arith.constant 0 : i32
    %c0_i32_2 = arith.constant 0 : i32
    return %c0_i32, %c1_i32_0, %1, %c0_i32_1 : i32, i32, i32, i32
  }
  func.func @transform_2(%arg0: i32, %arg1: i32) -> (i32, i32, i32) {
    %c1_i32 = arith.constant 1 : i32
    %0 = arith.muli %arg0, %c1_i32 : i32
    %1 = arith.addi %0, %arg1 : i32
    %c0_i32 = arith.constant 0 : i32
    %c0_i32_0 = arith.constant 0 : i32
    %c0_i32_1 = arith.constant 0 : i32
    return %c0_i32, %1, %c0_i32_0 : i32, i32, i32
  }
  func.func @transform_3(%arg0: i32, %arg1: i32) -> (i32, i32, i32, i32) {
    %c0_i32 = arith.constant 0 : i32
    %c0_i32_0 = arith.constant 0 : i32
    %c0_i32_1 = arith.constant 0 : i32
    %c0_i32_2 = arith.constant 0 : i32
    return %arg0, %c0_i32, %c0_i32_0, %c0_i32_1 : i32, i32, i32, i32
  }
}

</mosaic_0001>

<bundles_post_ra>
// kernel: tpu_custom_call.1
= control target key start
LH: loop header
LB: loop body
LE: loop exit
PB: predicated region body
PF: predicated region fallthrough
CT: control target
= control target key end

     0   :  { %s1093_s0 = inlined_call_operand.hbm [shape: f32[2,2,16,128], index: 0, kind: input, shape index: {}]   ;;  %s1094_s1 = inlined_call_operand.hbm [shape: f32[2,2,16,128], index: 1, kind: input, shape index: {}]   ;;  %s1095_s2 = inlined_call_operand.hbm [shape: f32[2,16,128], index: 2, kind: input, shape index: {}]   ;;  %s1096_s3 = inlined_call_operand.hbm [shape: f32[2,2,8,128], index: 3, kind: output, shape index: {}]  }
   0x1   :  { %1107 = sst [smem:[#allocation15_spill]] %s1093_s0 }
   0x2   :  { %1108 = sst [smem:[#allocation16_spill]] %s1094_s1 }
   0x3   :  { %8 = vsyncpa [#allocation3], 0 }
   0x4   :  { %10 = vsyncpa [#allocation3 + $0x1], 0 }
   0x5   :  { %11 = vsyncpa [#allocation6], 0 }
   0x6   :  { %13 = vsyncpa [#allocation6 + $0x1], 0 }
   0x7   :  { %14 = vsyncpa [#allocation4], 0 }
   0x8   :  { %16 = vsyncpa [#allocation4 + $0x1], 0  ;;  %s799_s12 = smov 0   ;;  %s801_s13 = smov 0  }
   0x9   :  { %s803_s14 = smov 0   ;;  %s805_s15 = smov 0  }
   0xa   :  { %s807_s16 = smov 0   ;;  %s809_s17 = smov 0  }
   0xb LB: > { %1109 = sst [smem:[#allocation12_spill]] %s761_s16  ;;  %s830_s18 = sadd.s32 4294967295, %s765_s17   ;;  %s765_s17 = sphi %s809_s17, %s22_s17   ;;  %s761_s16 = sphi %s807_s16, %s1140_s16   ;;  %s757_s15 = sphi %s805_s15, %s1135_s15   ;;  %s753_s14 = sphi %s803_s14, %s1139_s14   ;;  %s749_s13 = sphi %s801_s13, %s1138_s13   ;;  %s745_s12 = sphi %s799_s12, %s1137_s12  }
   0xc   : > { %s480_s19 = sadd.s32 4294967294, %s765_s17   ;;  %s34_s20 = sadd.s32 1, %s761_s16 }
   0xd   : > { %s43_s21 = sadd.s32 1, %s753_s14  ;;  %p36_p0 = scmp.ge.s32.totalorder %s34_s20, 2 }
   0xe   : > { %p50_p1 = scmp.ne.s32.totalorder %s753_s14, %s749_s13  ;;  %p51_p2 = scmp.eq.s32.totalorder %s765_s17, 0 }
   0xf   : > { %p56_p3 = scmp.ne.s32.totalorder %s749_s13, %s745_s12  ;;  %s1142_s20 = smov (%p36_p0, %s34_s20), 0 }
  0x10   : > { %1110 = sst [smem:[#allocation13_spill]] %s1142_s20  ;;  %p842_p4 = por %p51_p2, %p50_p1 }
  0x11   : > { %p57_p5 = scmp.eq.s32.totalorder %s830_s18, 0  ;;  %s40_s23 = ssub.s32 %s761_s16, %s1142_s20 }
  0x12   : > { %p136_p6 = scmp.eq.s32.totalorder %s830_s18, 1  ;;  %p41_p7 = scmp.eq.s32.totalorder %s40_s23, 0 }
  0x13   : > { %p850_p8 = por %p57_p5, %p56_p3  ;;  %p142_p10 = scmp.eq.s32.totalorder %s480_s19, 1 }
  0x14   : > { %p854_p9 = por %p136_p6, %p50_p1  ;;  %p526_p13 = scmp.lt.s32.totalorder %s765_s17, 2 }
  0x15   : > { %s1112_s24 = scalar_select %p850_p8, 1, 0 }
  0x16   : > { %s1113_s25 = scalar_select %p854_p9, 1, 0 }
  0x17   : > { %s859_s26 = scalar_select %p41_p7, %s753_s14, %s43_s21  }
  0x18   : > { %p861_p11 = por %p142_p10, %p56_p3  ;;  %s1097_s28 = sand.u32 1, %s753_s14  }
  0x19   : > { %1114 = sst [smem:[#allocation14_spill]] %s859_s26  ;;  %s870_s29 = sshll.u32 %s1097_s28, 4 }
  0x1a   : > { %s1115_s27 = scalar_select %p861_p11, 1, 0 }
  0x1b   : > { %s873_s30 = sshll.u32 %s761_s16, 7  ;;  %p877_p0 = pnand %p526_p13, %p842_p4 }
  0x1c   : > { %s183_s5 = sand.u32 1, %s765_s17   ;;  %s1117_s1 = sld [smem:[#allocation16_spill]] }
  0x1d   : > { %s187_s9 = scalar_lea.vmem [#allocation5], %s870_s29  ;;  %s891_s19 = scalar_lea.sflag [#allocation6], %s183_s5 }
  0x1e   : > { %s195_s10 = sshll.u32 %s187_s9, 4  ;;  %p896_p2 = pneg %p877_p0  ;;  %s889_s10 = int_to_ptr.vmem [resolvable:$true] %s195_s10 }
  0x22   : > { %s392_s8 = scalar_lea.hbm %s1117_s1, %s873_s30  ;;  %s593_s7 = scalar_lea.hbm %s1117_s1, 1024 }
  0x23   : > { %s887_s11 = scalar_lea.hbm %s392_s8, 256  ;;  %s618_s21 = scalar_lea.hbm %s392_s8, 512 }
  0x24   : > { %p589_p1 = scmp.ne.s32.totalorder %s887_s11, %s618_s21  ;;  %p594_p5 = scmp.lt.u32.totalorder %s887_s11, %s1117_s1 }
  0x25   : > { %p595_p6 = scmp.lt.u32.totalorder %s593_s7, %s618_s21  ;;  %p597_p10 = scmp.lt.u32.totalorder %s618_s21, %s887_s11 }
  0x26   : > { %p591_p3 = pnand %p896_p2, %p589_p1 }
  0x27   : > { %p596_p7 = por %p595_p6, %p594_p5 }
  0x28   : > { %p592_p4 = pneg %p591_p3 }
  0x29   : > { %p598_p13 = por %p597_p10, %p596_p7 }
  0x2b   : > { %p599_p12 = pnand %p598_p13, %p592_p4 }
  0x2d   : > { %602 = shalt.err (!%p599_p12)
}
  0x2e   : > { %s603_s5 = scalar_lea.vmem %s889_s10, 256  ;;  %s767_s8 = smov [#allocation5]  }
  0x2f   : > { %p604_p1 = scmp.ne.s32.totalorder %s889_s10, %s603_s5  ;;  %s608_s23 = sshll.u32 %s767_s8, 4  ;;  %s609_s23 = int_to_ptr.vmem [resolvable:$false] %s608_s23 }
  0x30   : > { %s610_s28 = scalar_lea.vmem %s609_s23, 512  ;;  %p611_p9 = scmp.lt.s32.totalorder %s889_s10, %s609_s23 }
  0x31   : > { %p606_p3 = pnand %p604_p1, %p896_p2  ;;  %p612_p8 = scmp.lt.s32.totalorder %s610_s28, %s603_s5 }
  0x33   : > { %p607_p11 = pneg %p606_p3  ;;  %p613_p5 = por %p612_p8, %p611_p9 }
  0x35   : > { %p614_p6 = pnand %p613_p5, %p607_p11 }
  0x37   : > { %617 = shalt.err (!%p614_p6)
}
  0x38   : > { %s1100_s21 = smov 512   ;;  %s1101_s6 = smov 128  }
  0x39   : > { %s1103_s7 = smov 8   ;;  %p489_p8 = scmp.ge.s32.totalorder %s765_s17, 1 }
  0x3a   : > { %518 = dma.hbm_to_vmem [thread:$0]  (!%p877_p0), %s887_s11, 256, %s889_s10, %s891_s19, %s1100_s21, %s1101_s6, %s1103_s7  }
  0x3b   : > { %p224_p9 = scmp.lt.s32.totalorder %s765_s17, 3  ;;  %s1120_s0 = sld [smem:[#allocation15_spill]] }
  0x3c   : > { %s166_s28 = scalar_lea.vmem [#allocation2], %s870_s29  ;;  %s942_s21 = scalar_lea.hbm %s1095_s2, %s873_s30 }
  0x3d   : > { %p925_p11 = pnand %p489_p8, %p224_p9  ;;  %s173_s1 = sshll.u32 %s166_s28, 4  ;;  %s936_s1 = int_to_ptr.vmem [resolvable:$true] %s173_s1 }
  0x3e   : > { %s1121_s6 = sand.u32 1, %s753_s14  }
  0x3f   : > { %s1119_s9 = scalar_select %p925_p11, 1, 0 }
  0x40   : > { %s946_s7 = scalar_lea.sflag [#allocation3], %s1121_s6 }
  0x41   : > { %s933_s23 = scalar_lea.hbm %s1120_s0, %s873_s30  ;;  %s624_s16 = scalar_lea.hbm %s1120_s0, 1024 }
  0x42   : > { %s619_s20 = scalar_lea.hbm %s933_s23, 256  ;;  %p625_p10 = scmp.lt.u32.totalorder %s933_s23, %s1120_s0 }
  0x43   : > { %p620_p12 = scmp.ne.s32.totalorder %s933_s23, %s619_s20  ;;  %p626_p13 = scmp.lt.u32.totalorder %s624_s16, %s619_s20 }
  0x44   : > { %p628_p3 = scmp.lt.u32.totalorder %s619_s20, %s933_s23 }
  0x45   : > { %p622_p4 = pnand %p620_p12, %p896_p2  ;;  %p627_p1 = por %p626_p13, %p625_p10 }
  0x47   : > { %p623_p7 = pneg %p622_p4  ;;  %p629_p5 = por %p628_p3, %p627_p1 }
  0x49   : > { %p630_p6 = pnand %p629_p5, %p623_p7 }
  0x4b   : > { %633 = shalt.err (!%p630_p6)
}
  0x4c   : > { %s634_s30 = scalar_lea.vmem %s936_s1, 256  ;;  %s771_s6 = smov [#allocation2]  }
  0x4d   : > { %p635_p8 = scmp.ne.s32.totalorder %s936_s1, %s634_s30  ;;  %s639_s10 = sshll.u32 %s771_s6, 4  ;;  %s640_s10 = int_to_ptr.vmem [resolvable:$false] %s639_s10 }
  0x4e   : > { %s641_s26 = scalar_lea.vmem %s640_s10, 512  ;;  %p642_p4 = scmp.lt.s32.totalorder %s936_s1, %s640_s10 }
  0x4f   : > { %p637_p9 = pnand %p635_p8, %p896_p2  ;;  %p643_p11 = scmp.lt.s32.totalorder %s641_s26, %s634_s30 }
  0x51   : > { %p638_p12 = pneg %p637_p9  ;;  %p644_p10 = por %p643_p11, %p642_p4 }
  0x53   : > { %p645_p13 = pnand %p644_p10, %p638_p12 }
  0x55   : > { %648 = shalt.err (!%p645_p13)
}
  0x56   : > { %s1122_s16 = smov 8   ;;  %s1123_s20 = smov 128  }
  0x57   : > { %s1124_s11 = smov 512   ;;  %s209_s5 = scalar_lea.vmem [#allocation7], %s870_s29 }
  0x58   : > { %515 = dma.hbm_to_vmem [thread:$0]  (!%p877_p0), %s933_s23, 256, %s936_s1, %s946_s7, %s1124_s11, %s1123_s20, %s1122_s16  }
  0x59   : > { %s216_s8 = sshll.u32 %s209_s5, 4  ;;  %s649_s28 = scalar_lea.hbm %s942_s21, 256  ;;  %s974_s8 = int_to_ptr.vmem [resolvable:$true] %s216_s8 }
  0x5a   : > { %p650_p11 = scmp.ne.s32.totalorder %s942_s21, %s649_s28  ;;  %s654_s10 = scalar_lea.hbm %s1095_s2, 512 }
  0x5b   : > { %p655_p3 = scmp.lt.u32.totalorder %s942_s21, %s1095_s2  ;;  %p656_p5 = scmp.lt.u32.totalorder %s654_s10, %s649_s28 }
  0x5c   : > { %p652_p7 = pnand %p650_p11, %p896_p2  ;;  %p658_p8 = scmp.lt.u32.totalorder %s649_s28, %s942_s21 }
  0x5d   : > { %p657_p6 = por %p656_p5, %p655_p3 }
  0x5e   : > { %p653_p1 = pneg %p652_p7 }
  0x5f   : > { %p659_p9 = por %p658_p8, %p657_p6 }
  0x61   : > { %p660_p12 = pnand %p659_p9, %p653_p1 }
  0x63   : > { %663 = shalt.err (!%p660_p12)
}
  0x64   : > { %s664_s1 = scalar_lea.vmem %s974_s8, 256  ;;  %s772_s29 = smov [#allocation7]  }
  0x65   : > { %p665_p4 = scmp.ne.s32.totalorder %s974_s8, %s664_s1  ;;  %s669_s7 = sshll.u32 %s772_s29, 4  ;;  %s670_s7 = int_to_ptr.vmem [resolvable:$false] %s669_s7 }
  0x66   : > { %s671_s0 = scalar_lea.vmem %s670_s7, 512  ;;  %p672_p11 = scmp.lt.s32.totalorder %s974_s8, %s670_s7 }
  0x67   : > { %p667_p10 = pnand %p665_p4, %p896_p2  ;;  %p673_p7 = scmp.lt.s32.totalorder %s671_s0, %s664_s1 }
  0x69   : > { %p668_p13 = pneg %p667_p10  ;;  %p674_p3 = por %p673_p7, %p672_p11 }
  0x6b   : > { %p675_p5 = pnand %p674_p3, %p668_p13 }
  0x6d   : > { %678 = shalt.err (!%p675_p5)
}
  0x6e   : > { %s773_s23 = smov 256   ;;  %p1125_p2 = scmp.ne.s32.totalorder %s1119_s9, 0 }
  0x6f   : > { %521 = dma.hbm_to_vmem [thread:$0]  (!%p877_p0), %s942_s21, 256, %s974_s8, %s891_s19, %s773_s23, %s1123_s20, %s1122_s16  }
  0x70   : > { %228 = sbr.rel (%p1125_p2) target bundleno = 164 (0xa4), region = 32  ;;  %s1003_s22 = sand.u32 (!%p1125_p2), 1, %s749_s13  }
  0x71   : > { %s1006_s11 = sshll.u32 (!%p1125_p2), %s1003_s22, 4  ;;  %s231_s5 = scalar_lea.sflag (!%p1125_p2), [#allocation3], %s1003_s22 }
  0x72   : > { %s234_s4 = scalar_lea.vmem (!%p1125_p2), [#allocation2], %s1006_s11  ;;  %p1126_p1 = scmp.ne.s32.totalorder (!%p1125_p2), %s1112_s24, 0 }
  0x77   : > { %732 = dma.done.wait (%p1126_p1), %s231_s5, 256  }
  0x78   : > { %734 = vsyncadd (%p1126_p1), %s231_s5, 4294967040  ;;  %s239_s19 = sand.u32 1, %s830_s18   ;;  %s243_s9 = scalar_lea.vmem [#allocation5], %s1006_s11 }
  0x79   : > { %s240_s21 = scalar_lea.sflag [#allocation6], %s239_s19 }
  0x7a   : > { %736 = dma.done.wait (%p1126_p1), %s240_s21, 512  }
  0x7b   : > { %738 = vsyncadd (%p1126_p1), %s240_s21, 4294966784  ;;  %v296_v0 = vld [vmem:[%s243_s9] sm:$0xff]  ;;  %v297_v1 = vld [vmem:[%s243_s9 + $0x8] sm:$0xff]  ;;  %s252_s16 = scalar_lea.vmem [#allocation7], %s1006_s11  ;;  %vm774_vm2 = vmmov 1   ;;  %v775_v12 = vmov 0.0  }
  0x7c   : > { %v298_v2 = vld [vmem:[%s252_s16] sm:$0xff]  ;;  %v299_v3 = vld [vmem:[%s252_s16 + $0x8] sm:$0xff]  ;;  %v304_v4 = vmax.f32 %v296_v0, -13.815511  ;;  %v305_v5 = vmax.f32 %v297_v1, -13.815511 }
  0x7d   : > { %vm300_vm0 = vcmp.ne.f32.partialorder %v298_v2, %v298_v2  ;;  %vm301_vm1 = vcmp.ne.f32.partialorder %v299_v3, %v299_v3  ;;  %v294_v6 = vld [vmem:[%s234_s4] sm:$0xff]  ;;  %v295_v9 = vld [vmem:[%s234_s4 + $0x8] sm:$0xff]  ;;  %s284_s18 = scalar_lea.vmem [#allocation8], %s1006_s11  ;;  %s503_s24 = sshll.u32 %s757_s15, 8 }
  0x7e   : > { %vm1021_vm3 = vmxor %vm300_vm0, %vm774_vm2  ;;  %v312_v8 = vmul.f32 -2.0, %v304_v4  ;;  %v313_v11 = vmul.f32 -2.0, %v305_v5  ;;  %v306_v16 = vsub.f32 %v298_v2, %v294_v6  ;;  %v307_v19 = vsub.f32 %v299_v3, %v295_v9  ;;  %s351_s20 = sshll.u32 %s284_s18, 4  ;;  %s1042_s30 = scalar_lea.hbm %s1096_s3, %s503_s24  ;;  %s1044_s20 = int_to_ptr.vmem [resolvable:$true] %s351_s20 }
  0x7f   : > { %vm1025_vm4 = vmxor %vm301_vm1, %vm774_vm2  ;;  %v495_v13 = vsel %vm1021_vm3, 1.0, %v775_v12  ;;  %s338_s6 = scalar_lea.sflag [#allocation4], %s1003_s22  ;;  %s679_s10 = scalar_lea.vmem %s1044_s20, 256 }
  0x80   : > { %v314_v14 = vmul.f32 1.442695, %v312_v8  ;;  %v496_v15 = vsel %vm1025_vm4, 1.0, %v775_v12  ;;  %v316_v17 = vmul.f32 1.442695, %v313_v11  ;;  %v308_v20 = vmul.f32 0.5, %v306_v16  ;;  %p680_p0 = scmp.ne.s32.totalorder %s1044_s20, %s679_s10 }
  0x81   : > { %v334_v18 = vadd.f32 %v496_v15, %v495_v13  ;;  %v309_v21 = vmul.f32 0.5, %v307_v19  ;;  %p1131_p6 = scmp.ne.s32.totalorder %s1113_s25, 0  ;;  %s776_s15 = smov [#allocation8]  }
  0x82   : > { %584 = vpow2.f32 %v314_v14  ;;  %v310_v22 = vmul.f32 %v308_v20, %v306_v16  ;;  %s683_s26 = sshll.u32 %s776_s15, 4  ;;  %s684_s26 = int_to_ptr.vmem [resolvable:$false] %s683_s26 }
  0x83   : > { %586 = vpow2.f32 %v316_v17  ;;  %497 = vst [vmem:[%s284_s18 + $0x8] sm:$0xff] %v334_v18  ;;  %v311_v23 = vmul.f32 %v309_v21, %v307_v19  ;;  %p681_p8 = pnand %p680_p0, %p1131_p6  ;;  %s685_s1 = scalar_lea.vmem %s684_s26, 512 }
  0x84   : > { %p686_p12 = scmp.lt.s32.totalorder %s1044_s20, %s684_s26  ;;  %p687_p4 = scmp.lt.s32.totalorder %s685_s1, %s679_s10 }
  0x85   : > { %p682_p9 = pneg %p681_p8 }
  0x86   : > { %p688_p10 = por %p687_p4, %p686_p12 }
  0x88   : > { %p689_p13 = pnand %p688_p10, %p682_p9 }
  0x8c   : > { %v585_v24 = vpop.eup %584 }
  0x8d   : > { %v587_v25 = vpop.eup %586  ;;  %v318_v26 = vmul.f32 %v585_v24, %v310_v22 }
  0x8e   : > { %v319_v27 = vmul.f32 %v587_v25, %v311_v23 }
  0x8f   : > { %v320_v28 = vadd.f32 %v318_v26, %v304_v4 }
  0x90   : > { %v321_v29 = vadd.f32 %v319_v27, %v305_v5 }
  0x91   : > { %v322_v30 = vsel %vm1021_vm3, %v320_v28, 0.0 }
  0x92   : > { %v323_v31 = vsel %vm1025_vm4, %v321_v29, 0.0 }
  0x93   : > { %v325_v32 = vadd.f32 %v323_v31, %v322_v30 }
  0x95   : > { %327 = vst [vmem:[%s284_s18] sm:$0xff] %v325_v32 }
  0x96   : > { %692 = shalt.err (!%p689_p13)
}
  0x97   : > { %s693_s29 = scalar_lea.hbm %s1042_s30, 256  ;;  %s697_s23 = scalar_lea.hbm %s1096_s3, 512 }
  0x98   : > { %p694_p11 = scmp.ne.s32.totalorder %s1042_s30, %s693_s29  ;;  %p698_p5 = scmp.lt.u32.totalorder %s1042_s30, %s1096_s3 }
  0x99   : > { %p699_p2 = scmp.lt.u32.totalorder %s697_s23, %s693_s29  ;;  %p701_p0 = scmp.lt.u32.totalorder %s693_s29, %s1042_s30 }
  0x9a   : > { %p695_p7 = pnand %p694_p11, %p1131_p6 }
  0x9b   : > { %p700_p1 = por %p699_p2, %p698_p5 }
  0x9c   : > { %p696_p3 = pneg %p695_p7 }
  0x9d   : > { %p702_p8 = por %p701_p0, %p700_p1 }
  0x9f   : > { %p703_p9 = pnand %p702_p8, %p696_p3 }
  0xa1   : > { %706 = shalt.err (!%p703_p9)
}
  0xa2   : > { %s777_s4 = smov 128   ;;  %s778_s19 = smov 8  }
  0xa3   : > { %510 = dma.vmem_to_hbm [thread:$0]  (%p1131_p6), %s1044_s20, 256, %s1042_s30, %s338_s6, %s777_s4, %s777_s4, %s778_s19  }
  0xa4 PF: > { %s366_s21 = sand.u32 1, %s745_s12   ;;  %p1132_p12 = scmp.ne.s32.totalorder %s1115_s27, 0 }
  0xa5   : > { %p1133_p4 = scmp.ge.s32.totalorder %s765_s17, 2  ;;  %s367_s9 = scalar_lea.sflag [#allocation4], %s366_s21 }
  0xa7   : > { %p523_p10 = pnand %p1133_p4, %p1132_p12 }
  0xa9   : > { %740 = dma.done.wait (!%p523_p10), %s367_s9, 256  }
  0xaa   : > { %742 = vsyncadd (!%p523_p10), %s367_s9, 4294967040  ;;  %s22_s17 = sadd.s32 1, %s765_s17   ;;  %s1134_s16 = sld [smem:[#allocation14_spill]] }
  0xab   : > { %p19_p13 = scmp.ge.s32.totalorder %s22_s17, 4   ;;  %s1135_s15 = sld [smem:[#allocation12_spill]] }
  0xac   : > { %s1136_s25 = sld [smem:[#allocation13_spill]]  ;;  %s1137_s12 = smov %s749_s13 }
  0xad   : > { %s1138_s13 = smov %s753_s14  ;;  %21 = sbr.rel (!%p19_p13) target bundleno = 11 (0xb), region = 106 }
  0xb0   : > { %s1139_s14 = smov %s1134_s16 }
  0xb2   : > { %s1140_s16 = smov %s1136_s25 }
  0xb4   :  { %372 = vsyncpa [#allocation3], 1 }
  0xb5   :  { %374 = vsyncpa [#allocation3 + $0x1], 1 }
  0xb6   :  { %375 = vsyncpa [#allocation6], 1 }
  0xb7   :  { %377 = vsyncpa [#allocation6 + $0x1], 1 }
  0xb8   :  { %378 = vsyncpa [#allocation4], 1 }
  0xb9   :  { %380 = vsyncpa [#allocation4 + $0x1], 1 }

</bundles_post_ra>
